<compile_context>
chip_gen: v5e
topology: v5e:2x2
jax: 0.10.0
libtpu: 0.0.40
codegen_flags: <defaults>
</compile_context>

<pallas_src>
import functools

import jax
import jax.numpy as jnp
from jax.experimental import pallas as pl
from jax.experimental.pallas import tpu as pltpu


# -----------------------------------------------------------------------------
# Fused kernel: all 4 layers, all node types, register/VMEM-resident throughout.
# -----------------------------------------------------------------------------
def _rgcn_fused_kernel(a_ref, h0_ref, w_ref, b_ref, out_ref, *,
                       src_offsets, slot, num_layers):
    """a_ref  : (N_PAD, R*SLOT)        relation-stacked normalized adjacency (layer-invariant)
       h0_ref : (N_PAD, F_PAD)         packed, lane-padded input node features
       w_ref  : (L, R, F_PAD, F_PAD)   zero-padded per-layer, per-relation weights
       b_ref  : (L, N_PAD, F_PAD)      per-layer, per-dst-type pre-summed bias rows
       out_ref: (N_PAD, F_PAD)         final-layer output
    """
    a = a_ref[...]                                 # (N_PAD, R*SLOT), loaded once
    h = h0_ref[...]                                # (N_PAD, F_PAD)

    for layer in range(num_layers):                # static unroll: 4 layers
        # Stage 1: per-relation feature transform, stacked along rows (2 vregs each,
        # 16-row aligned -> concat is pure vreg placement, no XLU shuffles).
        xw = jnp.concatenate(
            [jnp.dot(h[so:so + slot, :], w_ref[layer, r],
                     preferred_element_type=jnp.float32)
             for r, so in enumerate(src_offsets)], axis=0)   # (R*SLOT, F_PAD)
        # Stage 2: one matmul aggregates every relation; add pre-summed bias once.
        z = jnp.dot(a, xw, preferred_element_type=jnp.float32) + b_ref[layer]
        # Fused ReLU epilogue between layers; none after the last layer.
        h = jnp.maximum(z, 0.0) if layer < num_layers - 1 else z

    out_ref[...] = h                               # lane-dense (128-wide) store


def rgcn_forward_fused(a_stack, h0_packed, w_all, b_all, *, src_offsets, slot):
    """Run the full 4-layer RGCN forward as one Pallas call. Returns (N_PAD, F_PAD)."""
    num_layers = w_all.shape[0]
    n_pad, f_pad = h0_packed.shape
    kernel = functools.partial(
        _rgcn_fused_kernel,
        src_offsets=tuple(src_offsets), slot=slot, num_layers=num_layers)
    vmem_spec = pl.BlockSpec(memory_space=pltpu.MemorySpace.VMEM)
    return pl.pallas_call(
        kernel,
        out_shape=jax.ShapeDtypeStruct((n_pad, f_pad), jnp.float32),
        in_specs=[vmem_spec] * 4,
        out_specs=vmem_spec,
    )(a_stack, h0_packed, w_all, b_all)


# -----------------------------------------------------------------------------
# Deterministic synthetic graph / parameter construction.
# -----------------------------------------------------------------------------
def build_normalized_adj(key, n_dst, n_src, p=0.35):
    adj = jax.random.bernoulli(key, p=p, shape=(n_dst, n_src)).astype(jnp.float32)
    in_deg = jnp.maximum(adj.sum(axis=1, keepdims=True), 1.0)   # per dst node
    out_deg = jnp.maximum(adj.sum(axis=0, keepdims=True), 1.0)  # per src node
    return adj / jnp.sqrt(in_deg * out_deg)


def xavier_uniform(key, fan_in, fan_out):
    limit = jnp.sqrt(6.0 / (fan_in + fan_out))
    return jax.random.uniform(
        key, (fan_in, fan_out), minval=-limit, maxval=limit, dtype=jnp.float32)


if __name__ == "__main__":
    key = jax.random.PRNGKey(0)

    # Small heterogeneous graph: two node types, three relations.
    node_counts = {"user": 16, "item": 12}
    ntypes = ["user", "item"]
    rel_list = [
        ("user", "follows", "user"),
        ("user", "buys", "item"),
        ("item", "bought_by", "user"),
    ]

    # in_feats -> hid1 -> hid2 -> hid3 -> out_feats
    layer_dims = [8, 32, 32, 16, 8]
    num_layers = 4

    SLOT = 16                          # padded per-node-type row slot (sublane-friendly)
    F_PAD = 128                        # lane-dense feature width
    R = len(rel_list)
    N_PAD = SLOT * len(ntypes)         # 32 packed node rows
    type_base = {nt: i * SLOT for i, nt in enumerate(ntypes)}

    # Normalized dense adjacency per relation (DGL norm='both').
    adj_norm = {}
    for i, rel in enumerate(rel_list):
        src_t, _, dst_t = rel
        adj_norm[rel] = build_normalized_adj(
            jax.random.fold_in(key, 100 + i), node_counts[dst_t], node_counts[src_t])

    # Per-layer, per-relation GraphConv parameters (Xavier W; small non-zero biases
    # so the pre-summed-bias path is actually exercised numerically).
    params = []
    for layer in range(num_layers):
        f_in, f_out = layer_dims[layer], layer_dims[layer + 1]
        layer_params = {}
        for i, rel in enumerate(rel_list):
            wkey = jax.random.fold_in(key, 1000 + 10 * layer + i)
            bkey = jax.random.fold_in(key, 5000 + 10 * layer + i)
            w = xavier_uniform(wkey, f_in, f_out)
            b = 0.01 * jax.random.normal(bkey, (f_out,), dtype=jnp.float32)
            layer_params[rel] = (w, b)
        params.append(layer_params)

    # Input node features per node type.
    inputs = {
        nt: jax.random.normal(
            jax.random.fold_in(key, 2000 + j),
            (node_counts[nt], layer_dims[0]), dtype=jnp.float32)
        for j, nt in enumerate(ntypes)
    }

    # ---------------- host-side packing into lane-dense slabs ----------------
    # Packed initial features: (N_PAD, F_PAD), each node type in its SLOT rows.
    h0 = jnp.zeros((N_PAD, F_PAD), jnp.float32)
    for nt in ntypes:
        base = type_base[nt]
        h0 = h0.at[base:base + node_counts[nt], :layer_dims[0]].set(inputs[nt])

    # Relation-stacked adjacency (N_PAD, R*SLOT): one matmul aggregates all relations.
    a_stack = jnp.zeros((N_PAD, R * SLOT), jnp.float32)
    for r, rel in enumerate(rel_list):
        src_t, _, dst_t = rel
        nd, ns = node_counts[dst_t], node_counts[src_t]
        a_stack = a_stack.at[
            type_base[dst_t]:type_base[dst_t] + nd,
            r * SLOT:r * SLOT + ns].set(adj_norm[rel])

    # Stacked padded weights (L, R, F_PAD, F_PAD) and pre-summed packed biases
    # (L, N_PAD, F_PAD): a single operand / DMA each.
    w_all = jnp.zeros((num_layers, R, F_PAD, F_PAD), jnp.float32)
    b_all = jnp.zeros((num_layers, N_PAD, F_PAD), jnp.float32)
    for layer in range(num_layers):
        f_in, f_out = layer_dims[layer], layer_dims[layer + 1]
        for r, rel in enumerate(rel_list):
            _, _, dst_t = rel
            w, b = params[layer][rel]
            w_all = w_all.at[layer, r, :f_in, :f_out].set(w)
            base = type_base[dst_t]
            b_all = b_all.at[layer, base:base + SLOT, :f_out].add(b[None, :])

    src_offsets = tuple(type_base[rel[0]] for rel in rel_list)

    # ---------------- run the fused kernel ----------------
    out_packed = rgcn_forward_fused(
        a_stack, h0, w_all, b_all, src_offsets=src_offsets, slot=SLOT)
    out_packed = jax.block_until_ready(out_packed)

    out = {
        nt: out_packed[type_base[nt]:type_base[nt] + node_counts[nt], :layer_dims[-1]]
        for nt in ntypes
    }

    # ---------------- pure-JAX reference of the same math ----------------
    def ref_forward(h):
        for layer in range(num_layers):
            new_h = {}
            for rel in rel_list:
                src_t, _, dst_t = rel
                w, b = params[layer][rel]
                z = adj_norm[rel] @ (h[src_t] @ w) + b[None, :]
                new_h[dst_t] = new_h.get(dst_t, 0.0) + z
            if layer < num_layers - 1:
                new_h = {k: jnp.maximum(v, 0.0) for k, v in new_h.items()}
            h = new_h
        return h

    ref = ref_forward(inputs)
    for nt in ntypes:
        assert out[nt].shape == (node_counts[nt], layer_dims[-1])
        assert jnp.allclose(out[nt], ref[nt], atol=1e-4, rtol=1e-4), nt

    print("KERNEL_OK")
</pallas_src>

<mosaic_0001>
module attributes {stable_mosaic.version = 11 : i64} {
  func.func @_rgcn_fused_kernel(%arg0: memref<32x48xf32, #tpu.memory_space<vmem>>, %arg1: memref<32x128xf32, #tpu.memory_space<vmem>>, %arg2: memref<4x3x128x128xf32, #tpu.memory_space<vmem>>, %arg3: memref<4x32x128xf32, #tpu.memory_space<vmem>>, %arg4: memref<32x128xf32, #tpu.memory_space<vmem>>) attributes {dimension_semantics = [], scalar_prefetch = 0 : i64, scratch_operands = 0 : i64, tpu.core_type = #tpu.core_type<tc>} {
    %c0 = arith.constant 0 : index
    %c0_0 = arith.constant 0 : index
    %0 = vector.load %arg0[%c0, %c0_0] : memref<32x48xf32, #tpu.memory_space<vmem>>, vector<32x48xf32>
    %c0_1 = arith.constant 0 : index
    %c0_2 = arith.constant 0 : index
    %1 = vector.load %arg1[%c0_1, %c0_2] : memref<32x128xf32, #tpu.memory_space<vmem>>, vector<32x128xf32>
    %2 = vector.extract_strided_slice %1 {offsets = [0, 0], sizes = [16, 128], strides = [1, 1]} : vector<32x128xf32> to vector<16x128xf32>
    %c0_3 = arith.constant 0 : index
    %c0_4 = arith.constant 0 : index
    %c0_5 = arith.constant 0 : index
    %c0_6 = arith.constant 0 : index
    %3 = vector.load %arg2[%c0_3, %c0_4, %c0_5, %c0_6] : memref<4x3x128x128xf32, #tpu.memory_space<vmem>>, vector<1x1x128x128xf32>
    %4 = vector.shape_cast %3 : vector<1x1x128x128xf32> to vector<128x128xf32>
    %cst = arith.constant dense<0.000000e+00> : vector<16x128xf32>
    %5 = tpu.matmul %2, %4, %cst {dimension_numbers = #tpu.dot_dimension_numbers<[1], [0], [0], [1], [0, 0, 1, 1], [], []>} : vector<16x128xf32>, vector<128x128xf32>, vector<16x128xf32> -> vector<16x128xf32>
    %6 = vector.extract_strided_slice %1 {offsets = [0, 0], sizes = [16, 128], strides = [1, 1]} : vector<32x128xf32> to vector<16x128xf32>
    %c0_7 = arith.constant 0 : index
    %c1 = arith.constant 1 : index
    %c0_8 = arith.constant 0 : index
    %c0_9 = arith.constant 0 : index
    %7 = vector.load %arg2[%c0_7, %c1, %c0_8, %c0_9] : memref<4x3x128x128xf32, #tpu.memory_space<vmem>>, vector<1x1x128x128xf32>
    %8 = vector.shape_cast %7 : vector<1x1x128x128xf32> to vector<128x128xf32>
    %cst_10 = arith.constant dense<0.000000e+00> : vector<16x128xf32>
    %9 = tpu.matmul %6, %8, %cst_10 {dimension_numbers = #tpu.dot_dimension_numbers<[1], [0], [0], [1], [0, 0, 1, 1], [], []>} : vector<16x128xf32>, vector<128x128xf32>, vector<16x128xf32> -> vector<16x128xf32>
    %10 = vector.extract_strided_slice %1 {offsets = [16, 0], sizes = [16, 128], strides = [1, 1]} : vector<32x128xf32> to vector<16x128xf32>
    %c0_11 = arith.constant 0 : index
    %c2 = arith.constant 2 : index
    %c0_12 = arith.constant 0 : index
    %c0_13 = arith.constant 0 : index
    %11 = vector.load %arg2[%c0_11, %c2, %c0_12, %c0_13] : memref<4x3x128x128xf32, #tpu.memory_space<vmem>>, vector<1x1x128x128xf32>
    %12 = vector.shape_cast %11 : vector<1x1x128x128xf32> to vector<128x128xf32>
    %cst_14 = arith.constant dense<0.000000e+00> : vector<16x128xf32>
    %13 = tpu.matmul %10, %12, %cst_14 {dimension_numbers = #tpu.dot_dimension_numbers<[1], [0], [0], [1], [0, 0, 1, 1], [], []>} : vector<16x128xf32>, vector<128x128xf32>, vector<16x128xf32> -> vector<16x128xf32>
    %14 = tpu.concatenate %5, %9, %13 in 0 : vector<16x128xf32>, vector<16x128xf32>, vector<16x128xf32> -> vector<48x128xf32>
    %cst_15 = arith.constant dense<0.000000e+00> : vector<32x128xf32>
    %15 = tpu.matmul %0, %14, %cst_15 {dimension_numbers = #tpu.dot_dimension_numbers<[1], [0], [0], [1], [0, 0, 1, 1], [], []>} : vector<32x48xf32>, vector<48x128xf32>, vector<32x128xf32> -> vector<32x128xf32>
    %c0_16 = arith.constant 0 : index
    %c0_17 = arith.constant 0 : index
    %c0_18 = arith.constant 0 : index
    %16 = vector.load %arg3[%c0_16, %c0_17, %c0_18] : memref<4x32x128xf32, #tpu.memory_space<vmem>>, vector<1x32x128xf32>
    %17 = vector.shape_cast %16 : vector<1x32x128xf32> to vector<32x128xf32>
    %18 = arith.addf %15, %17 : vector<32x128xf32>
    %cst_19 = arith.constant 0.000000e+00 : f32
    %19 = vector.broadcast %cst_19 : f32 to vector<32x128xf32>
    %20 = arith.maximumf %18, %19 : vector<32x128xf32>
    %21 = vector.extract_strided_slice %20 {offsets = [0, 0], sizes = [16, 128], strides = [1, 1]} : vector<32x128xf32> to vector<16x128xf32>
    %c1_20 = arith.constant 1 : index
    %c0_21 = arith.constant 0 : index
    %c0_22 = arith.constant 0 : index
    %c0_23 = arith.constant 0 : index
    %22 = vector.load %arg2[%c1_20, %c0_21, %c0_22, %c0_23] : memref<4x3x128x128xf32, #tpu.memory_space<vmem>>, vector<1x1x128x128xf32>
    %23 = vector.shape_cast %22 : vector<1x1x128x128xf32> to vector<128x128xf32>
    %cst_24 = arith.constant dense<0.000000e+00> : vector<16x128xf32>
    %24 = tpu.matmul %21, %23, %cst_24 {dimension_numbers = #tpu.dot_dimension_numbers<[1], [0], [0], [1], [0, 0, 1, 1], [], []>} : vector<16x128xf32>, vector<128x128xf32>, vector<16x128xf32> -> vector<16x128xf32>
    %25 = vector.extract_strided_slice %20 {offsets = [0, 0], sizes = [16, 128], strides = [1, 1]} : vector<32x128xf32> to vector<16x128xf32>
    %c1_25 = arith.constant 1 : index
    %c1_26 = arith.constant 1 : index
    %c0_27 = arith.constant 0 : index
    %c0_28 = arith.constant 0 : index
    %26 = vector.load %arg2[%c1_25, %c1_26, %c0_27, %c0_28] : memref<4x3x128x128xf32, #tpu.memory_space<vmem>>, vector<1x1x128x128xf32>
    %27 = vector.shape_cast %26 : vector<1x1x128x128xf32> to vector<128x128xf32>
    %cst_29 = arith.constant dense<0.000000e+00> : vector<16x128xf32>
    %28 = tpu.matmul %25, %27, %cst_29 {dimension_numbers = #tpu.dot_dimension_numbers<[1], [0], [0], [1], [0, 0, 1, 1], [], []>} : vector<16x128xf32>, vector<128x128xf32>, vector<16x128xf32> -> vector<16x128xf32>
    %29 = vector.extract_strided_slice %20 {offsets = [16, 0], sizes = [16, 128], strides = [1, 1]} : vector<32x128xf32> to vector<16x128xf32>
    %c1_30 = arith.constant 1 : index
    %c2_31 = arith.constant 2 : index
    %c0_32 = arith.constant 0 : index
    %c0_33 = arith.constant 0 : index
    %30 = vector.load %arg2[%c1_30, %c2_31, %c0_32, %c0_33] : memref<4x3x128x128xf32, #tpu.memory_space<vmem>>, vector<1x1x128x128xf32>
    %31 = vector.shape_cast %30 : vector<1x1x128x128xf32> to vector<128x128xf32>
    %cst_34 = arith.constant dense<0.000000e+00> : vector<16x128xf32>
    %32 = tpu.matmul %29, %31, %cst_34 {dimension_numbers = #tpu.dot_dimension_numbers<[1], [0], [0], [1], [0, 0, 1, 1], [], []>} : vector<16x128xf32>, vector<128x128xf32>, vector<16x128xf32> -> vector<16x128xf32>
    %33 = tpu.concatenate %24, %28, %32 in 0 : vector<16x128xf32>, vector<16x128xf32>, vector<16x128xf32> -> vector<48x128xf32>
    %cst_35 = arith.constant dense<0.000000e+00> : vector<32x128xf32>
    %34 = tpu.matmul %0, %33, %cst_35 {dimension_numbers = #tpu.dot_dimension_numbers<[1], [0], [0], [1], [0, 0, 1, 1], [], []>} : vector<32x48xf32>, vector<48x128xf32>, vector<32x128xf32> -> vector<32x128xf32>
    %c1_36 = arith.constant 1 : index
    %c0_37 = arith.constant 0 : index
    %c0_38 = arith.constant 0 : index
    %35 = vector.load %arg3[%c1_36, %c0_37, %c0_38] : memref<4x32x128xf32, #tpu.memory_space<vmem>>, vector<1x32x128xf32>
    %36 = vector.shape_cast %35 : vector<1x32x128xf32> to vector<32x128xf32>
    %37 = arith.addf %34, %36 : vector<32x128xf32>
    %cst_39 = arith.constant 0.000000e+00 : f32
    %38 = vector.broadcast %cst_39 : f32 to vector<32x128xf32>
    %39 = arith.maximumf %37, %38 : vector<32x128xf32>
    %40 = vector.extract_strided_slice %39 {offsets = [0, 0], sizes = [16, 128], strides = [1, 1]} : vector<32x128xf32> to vector<16x128xf32>
    %c2_40 = arith.constant 2 : index
    %c0_41 = arith.constant 0 : index
    %c0_42 = arith.constant 0 : index
    %c0_43 = arith.constant 0 : index
    %41 = vector.load %arg2[%c2_40, %c0_41, %c0_42, %c0_43] : memref<4x3x128x128xf32, #tpu.memory_space<vmem>>, vector<1x1x128x128xf32>
    %42 = vector.shape_cast %41 : vector<1x1x128x128xf32> to vector<128x128xf32>
    %cst_44 = arith.constant dense<0.000000e+00> : vector<16x128xf32>
    %43 = tpu.matmul %40, %42, %cst_44 {dimension_numbers = #tpu.dot_dimension_numbers<[1], [0], [0], [1], [0, 0, 1, 1], [], []>} : vector<16x128xf32>, vector<128x128xf32>, vector<16x128xf32> -> vector<16x128xf32>
    %44 = vector.extract_strided_slice %39 {offsets = [0, 0], sizes = [16, 128], strides = [1, 1]} : vector<32x128xf32> to vector<16x128xf32>
    %c2_45 = arith.constant 2 : index
    %c1_46 = arith.constant 1 : index
    %c0_47 = arith.constant 0 : index
    %c0_48 = arith.constant 0 : index
    %45 = vector.load %arg2[%c2_45, %c1_46, %c0_47, %c0_48] : memref<4x3x128x128xf32, #tpu.memory_space<vmem>>, vector<1x1x128x128xf32>
    %46 = vector.shape_cast %45 : vector<1x1x128x128xf32> to vector<128x128xf32>
    %cst_49 = arith.constant dense<0.000000e+00> : vector<16x128xf32>
    %47 = tpu.matmul %44, %46, %cst_49 {dimension_numbers = #tpu.dot_dimension_numbers<[1], [0], [0], [1], [0, 0, 1, 1], [], []>} : vector<16x128xf32>, vector<128x128xf32>, vector<16x128xf32> -> vector<16x128xf32>
    %48 = vector.extract_strided_slice %39 {offsets = [16, 0], sizes = [16, 128], strides = [1, 1]} : vector<32x128xf32> to vector<16x128xf32>
    %c2_50 = arith.constant 2 : index
    %c2_51 = arith.constant 2 : index
    %c0_52 = arith.constant 0 : index
    %c0_53 = arith.constant 0 : index
    %49 = vector.load %arg2[%c2_50, %c2_51, %c0_52, %c0_53] : memref<4x3x128x128xf32, #tpu.memory_space<vmem>>, vector<1x1x128x128xf32>
    %50 = vector.shape_cast %49 : vector<1x1x128x128xf32> to vector<128x128xf32>
    %cst_54 = arith.constant dense<0.000000e+00> : vector<16x128xf32>
    %51 = tpu.matmul %48, %50, %cst_54 {dimension_numbers = #tpu.dot_dimension_numbers<[1], [0], [0], [1], [0, 0, 1, 1], [], []>} : vector<16x128xf32>, vector<128x128xf32>, vector<16x128xf32> -> vector<16x128xf32>
    %52 = tpu.concatenate %43, %47, %51 in 0 : vector<16x128xf32>, vector<16x128xf32>, vector<16x128xf32> -> vector<48x128xf32>
    %cst_55 = arith.constant dense<0.000000e+00> : vector<32x128xf32>
    %53 = tpu.matmul %0, %52, %cst_55 {dimension_numbers = #tpu.dot_dimension_numbers<[1], [0], [0], [1], [0, 0, 1, 1], [], []>} : vector<32x48xf32>, vector<48x128xf32>, vector<32x128xf32> -> vector<32x128xf32>
    %c2_56 = arith.constant 2 : index
    %c0_57 = arith.constant 0 : index
    %c0_58 = arith.constant 0 : index
    %54 = vector.load %arg3[%c2_56, %c0_57, %c0_58] : memref<4x32x128xf32, #tpu.memory_space<vmem>>, vector<1x32x128xf32>
    %55 = vector.shape_cast %54 : vector<1x32x128xf32> to vector<32x128xf32>
    %56 = arith.addf %53, %55 : vector<32x128xf32>
    %cst_59 = arith.constant 0.000000e+00 : f32
    %57 = vector.broadcast %cst_59 : f32 to vector<32x128xf32>
    %58 = arith.maximumf %56, %57 : vector<32x128xf32>
    %59 = vector.extract_strided_slice %58 {offsets = [0, 0], sizes = [16, 128], strides = [1, 1]} : vector<32x128xf32> to vector<16x128xf32>
    %c3 = arith.constant 3 : index
    %c0_60 = arith.constant 0 : index
    %c0_61 = arith.constant 0 : index
    %c0_62 = arith.constant 0 : index
    %60 = vector.load %arg2[%c3, %c0_60, %c0_61, %c0_62] : memref<4x3x128x128xf32, #tpu.memory_space<vmem>>, vector<1x1x128x128xf32>
    %61 = vector.shape_cast %60 : vector<1x1x128x128xf32> to vector<128x128xf32>
    %cst_63 = arith.constant dense<0.000000e+00> : vector<16x128xf32>
    %62 = tpu.matmul %59, %61, %cst_63 {dimension_numbers = #tpu.dot_dimension_numbers<[1], [0], [0], [1], [0, 0, 1, 1], [], []>} : vector<16x128xf32>, vector<128x128xf32>, vector<16x128xf32> -> vector<16x128xf32>
    %63 = vector.extract_strided_slice %58 {offsets = [0, 0], sizes = [16, 128], strides = [1, 1]} : vector<32x128xf32> to vector<16x128xf32>
    %c3_64 = arith.constant 3 : index
    %c1_65 = arith.constant 1 : index
    %c0_66 = arith.constant 0 : index
    %c0_67 = arith.constant 0 : index
    %64 = vector.load %arg2[%c3_64, %c1_65, %c0_66, %c0_67] : memref<4x3x128x128xf32, #tpu.memory_space<vmem>>, vector<1x1x128x128xf32>
    %65 = vector.shape_cast %64 : vector<1x1x128x128xf32> to vector<128x128xf32>
    %cst_68 = arith.constant dense<0.000000e+00> : vector<16x128xf32>
    %66 = tpu.matmul %63, %65, %cst_68 {dimension_numbers = #tpu.dot_dimension_numbers<[1], [0], [0], [1], [0, 0, 1, 1], [], []>} : vector<16x128xf32>, vector<128x128xf32>, vector<16x128xf32> -> vector<16x128xf32>
    %67 = vector.extract_strided_slice %58 {offsets = [16, 0], sizes = [16, 128], strides = [1, 1]} : vector<32x128xf32> to vector<16x128xf32>
    %c3_69 = arith.constant 3 : index
    %c2_70 = arith.constant 2 : index
    %c0_71 = arith.constant 0 : index
    %c0_72 = arith.constant 0 : index
    %68 = vector.load %arg2[%c3_69, %c2_70, %c0_71, %c0_72] : memref<4x3x128x128xf32, #tpu.memory_space<vmem>>, vector<1x1x128x128xf32>
    %69 = vector.shape_cast %68 : vector<1x1x128x128xf32> to vector<128x128xf32>
    %cst_73 = arith.constant dense<0.000000e+00> : vector<16x128xf32>
    %70 = tpu.matmul %67, %69, %cst_73 {dimension_numbers = #tpu.dot_dimension_numbers<[1], [0], [0], [1], [0, 0, 1, 1], [], []>} : vector<16x128xf32>, vector<128x128xf32>, vector<16x128xf32> -> vector<16x128xf32>
    %71 = tpu.concatenate %62, %66, %70 in 0 : vector<16x128xf32>, vector<16x128xf32>, vector<16x128xf32> -> vector<48x128xf32>
    %cst_74 = arith.constant dense<0.000000e+00> : vector<32x128xf32>
    %72 = tpu.matmul %0, %71, %cst_74 {dimension_numbers = #tpu.dot_dimension_numbers<[1], [0], [0], [1], [0, 0, 1, 1], [], []>} : vector<32x48xf32>, vector<48x128xf32>, vector<32x128xf32> -> vector<32x128xf32>
    %c3_75 = arith.constant 3 : index
    %c0_76 = arith.constant 0 : index
    %c0_77 = arith.constant 0 : index
    %73 = vector.load %arg3[%c3_75, %c0_76, %c0_77] : memref<4x32x128xf32, #tpu.memory_space<vmem>>, vector<1x32x128xf32>
    %74 = vector.shape_cast %73 : vector<1x32x128xf32> to vector<32x128xf32>
    %75 = arith.addf %72, %74 : vector<32x128xf32>
    %c0_78 = arith.constant 0 : index
    %c0_79 = arith.constant 0 : index
    %76 = vector.load %arg4[%c0_78, %c0_79] : memref<32x128xf32, #tpu.memory_space<vmem>>, vector<32x128xf32>
    tpu.vector_store %arg4[%c0_78, %c0_79], %75 {strides = array<i32>} : memref<32x128xf32, #tpu.memory_space<vmem>>, vector<32x128xf32>,
    return
  }
}

</mosaic_0001>

<bundles_post_ra>
// kernel: tpu_custom_call.1
= control target key start
LH: loop header
LB: loop body
LE: loop exit
PB: predicated region body
PF: predicated region fallthrough
CT: control target
= control target key end

     0   :  { %9 = vsyncpa [#allocation3], 0  ;;  %s1012_s0 = inlined_call_operand.hbm [shape: f32[32,48], index: 0, kind: input, shape index: {}]   ;;  %s1013_s1 = inlined_call_operand.hbm [shape: f32[32,128], index: 1, kind: input, shape index: {}]   ;;  %s1014_s2 = inlined_call_operand.hbm [shape: f32[4,3,128,128], index: 2, kind: input, shape index: {}]   ;;  %s1015_s3 = inlined_call_operand.hbm [shape: f32[4,32,128], index: 3, kind: input, shape index: {}]   ;;  %s1016_s4 = inlined_call_operand.hbm [shape: f32[32,128], index: 4, kind: output, shape index: {}]  }
   0x1   :  { %10 = vsyncpa [#allocation6], 0 }
   0x2   :  { %11 = vsyncpa [#allocation9], 0 }
   0x3   :  { %12 = vsyncpa [#allocation4], 0  ;;  %s30_s17 = sshll.u32 %s1013_s1, 4  ;;  %s910_s18 = smov [#allocation5]   ;;  %s31_s17 = int_to_ptr.hbm [resolvable:$true] %s30_s17 }
   0x4   :  { %s32_s19 = sshll.u32 %s910_s18, 4  ;;  %s17_s22 = sshll.u32 %s1012_s0, 4  ;;  %s33_s19 = int_to_ptr.vmem [resolvable:$true] %s32_s19  ;;  %s18_s22 = int_to_ptr.hbm [resolvable:$true] %s17_s22 }
   0x5   :  { %s911_s23 = smov 128   ;;  %s912_s24 = smov 8  }
   0x6   :  { %38 = dma.hbm_to_vmem [thread:$0]  %s31_s17, 512, %s33_s19, [#allocation6], %s911_s23, %s911_s23, %s912_s24  }
   0x7   :  { %s913_s25 = smov [#allocation2]   ;;  %s43_s1 = sshll.u32 %s1014_s2, 4  ;;  %s44_s1 = int_to_ptr.hbm [resolvable:$true] %s43_s1 }
   0x8   :  { %s19_s26 = sshll.u32 %s913_s25, 4  ;;  %s56_s30 = sshll.u32 %s1015_s3, 4  ;;  %s20_s26 = int_to_ptr.vmem [resolvable:$true] %s19_s26  ;;  %s57_s30 = int_to_ptr.hbm [resolvable:$true] %s56_s30 }
   0x9   :  { %25 = dma.hbm_to_vmem [thread:$0]  %s18_s22, 512, %s20_s26, [#allocation3], %s911_s23, %s911_s23, %s912_s24  }
   0xa   :  { %s914_s5 = smov [#allocation7]   ;;  %s915_s7 = smov [#allocation8]  }
   0xb   :  { %s45_s6 = sshll.u32 %s914_s5, 4  ;;  %s58_s2 = sshll.u32 %s915_s7, 4  ;;  %s46_s6 = int_to_ptr.vmem [resolvable:$true] %s45_s6  ;;  %s59_s2 = int_to_ptr.vmem [resolvable:$true] %s58_s2 }
   0xc   :  { %51 = dma.hbm_to_vmem [thread:$0]  %s44_s1, 24576, %s46_s6, [#allocation6], %s911_s23, %s911_s23, %s912_s24  }
   0xd   :  { %64 = dma.hbm_to_vmem [thread:$0]  %s57_s30, 2048, %s59_s2, [#allocation9], %s911_s23, %s911_s23, %s912_s24  }
   0xe   :  { %902 = dma.done.wait [#allocation3], 512  }
   0xf   :  { %903 = vsyncadd [#allocation3], 4294966784 }
  0x10   :  { %904 = dma.done.wait [#allocation6], 25088  }
  0x11   :  { %905 = vsyncadd [#allocation6], 4294942208 }
  0x12   :  { %906 = dma.done.wait [#allocation9], 2048  }
  0x13   :  { %907 = vsyncadd [#allocation9], 4294965248  ;;  %v184_v0 = vld [vmem:[#allocation7 + $0x178] sm:$0xff]  ;;  %v183_v1 = vld [vmem:[#allocation7 + $0x170] sm:$0xff]  ;;  %vm212_vm0 = vcmask 392192   ;;  %s916_s3 = smov [#allocation10]  }
  0x14   :  { %185 = vmatpush.msra.mxu2 %v184_v0  ;;  %v144_v2 = vld [vmem:[#allocation7 + $0xf8] sm:$0xff]  ;;  %v182_v3 = vld [vmem:[#allocation7 + $0x168] sm:$0xff]  ;;  %v143_v4 = vld [vmem:[#allocation7 + $0xf0] sm:$0xff]  ;;  %s736_s8 = sshll.u32 %s916_s3, 4  ;;  %s738_s11 = sshll.u32 %s1016_s4, 4  ;;  %s737_s8 = int_to_ptr.vmem [resolvable:$true] %s736_s8  ;;  %s739_s11 = int_to_ptr.hbm [resolvable:$true] %s738_s11 }
  0x15   :  { %145 = vmatpush.msra.mxu1 %v144_v2  ;;  %v104_v5 = vld [vmem:[#allocation7 + $0x78] sm:$0xff]  ;;  %v142_v6 = vld [vmem:[#allocation7 + $0xe8] sm:$0xff]  ;;  %v181_v7 = vld [vmem:[#allocation7 + $0x160] sm:$0xff] }
  0x16   :  { %186 = vmatpush.msra.mxu2 %v183_v1  ;;  %105 = vmatpush.msra.mxu0 %v104_v5  ;;  %v103_v8 = vld [vmem:[#allocation7 + $0x70] sm:$0xff]  ;;  %v141_v9 = vld [vmem:[#allocation7 + $0xe0] sm:$0xff]  ;;  %v102_v10 = vld [vmem:[#allocation7 + $0x68] sm:$0xff] }
  0x17   :  { %146 = vmatpush.msra.mxu1 %v143_v4  ;;  %v180_v11 = vld [vmem:[#allocation7 + $0x158] sm:$0xff]  ;;  %v101_v13 = vld [vmem:[#allocation7 + $0x60] sm:$0xff]  ;;  %v179_v14 = vld [vmem:[#allocation7 + $0x150] sm:$0xff] }
  0x18   :  { %187 = vmatpush.msra.mxu2 %v182_v3  ;;  %106 = vmatpush.msra.mxu0 %v103_v8  ;;  %v140_v12 = vld [vmem:[#allocation7 + $0xd8] sm:$0xff]  ;;  %v139_v15 = vld [vmem:[#allocation7 + $0xd0] sm:$0xff]  ;;  %v178_v17 = vld [vmem:[#allocation7 + $0x148] sm:$0xff] }
  0x19   :  { %147 = vmatpush.msra.mxu1 %v142_v6  ;;  %v100_v16 = vld [vmem:[#allocation7 + $0x58] sm:$0xff]  ;;  %v138_v18 = vld [vmem:[#allocation7 + $0xc8] sm:$0xff]  ;;  %v99_v19 = vld [vmem:[#allocation7 + $0x50] sm:$0xff] }
  0x1a   :  { %188 = vmatpush.msra.mxu2 %v181_v7  ;;  %107 = vmatpush.msra.mxu0 %v102_v10  ;;  %v177_v20 = vld [vmem:[#allocation7 + $0x140] sm:$0xff]  ;;  %v98_v22 = vld [vmem:[#allocation7 + $0x48] sm:$0xff]  ;;  %v176_v23 = vld [vmem:[#allocation7 + $0x138] sm:$0xff] }
  0x1b   :  { %148 = vmatpush.msra.mxu1 %v141_v9  ;;  %v137_v21 = vld [vmem:[#allocation7 + $0xc0] sm:$0xff]  ;;  %v136_v24 = vld [vmem:[#allocation7 + $0xb8] sm:$0xff]  ;;  %v175_v26 = vld [vmem:[#allocation7 + $0x130] sm:$0xff] }
  0x1c   :  { %189 = vmatpush.msra.mxu2 %v180_v11  ;;  %108 = vmatpush.msra.mxu0 %v101_v13  ;;  %v97_v25 = vld [vmem:[#allocation7 + $0x40] sm:$0xff]  ;;  %v135_v27 = vld [vmem:[#allocation7 + $0xb0] sm:$0xff]  ;;  %v96_v28 = vld [vmem:[#allocation7 + $0x38] sm:$0xff] }
  0x1d   :  { %149 = vmatpush.msra.mxu1 %v140_v12  ;;  %v174_v29 = vld [vmem:[#allocation7 + $0x128] sm:$0xff]  ;;  %v95_v31 = vld [vmem:[#allocation7 + $0x30] sm:$0xff]  ;;  %v173_v32 = vld [vmem:[#allocation7 + $0x120] sm:$0xff] }
  0x1e   :  { %190 = vmatpush.msra.mxu2 %v179_v14  ;;  %109 = vmatpush.msra.mxu0 %v100_v16  ;;  %v134_v30 = vld [vmem:[#allocation7 + $0xa8] sm:$0xff]  ;;  %v133_v33 = vld [vmem:[#allocation7 + $0xa0] sm:$0xff]  ;;  %v172_v35 = vld [vmem:[#allocation7 + $0x118] sm:$0xff] }
  0x1f   :  { %150 = vmatpush.msra.mxu1 %v139_v15  ;;  %v94_v34 = vld [vmem:[#allocation7 + $0x28] sm:$0xff]  ;;  %v132_v36 = vld [vmem:[#allocation7 + $0x98] sm:$0xff]  ;;  %v93_v37 = vld [vmem:[#allocation7 + $0x20] sm:$0xff] }
  0x20   :  { %191 = vmatpush.msra.mxu2 %v178_v17  ;;  %110 = vmatpush.msra.mxu0 %v99_v19  ;;  %v171_v38 = vld [vmem:[#allocation7 + $0x110] sm:$0xff]  ;;  %v92_v40 = vld [vmem:[#allocation7 + $0x18] sm:$0xff]  ;;  %v170_v41 = vld [vmem:[#allocation7 + $0x108] sm:$0xff] }
  0x21   :  { %151 = vmatpush.msra.mxu1 %v138_v18  ;;  %v131_v39 = vld [vmem:[#allocation7 + $0x90] sm:$0xff]  ;;  %v130_v42 = vld [vmem:[#allocation7 + $0x88] sm:$0xff]  ;;  %v169_v44 = vld [vmem:[#allocation7 + $0x100] sm:$0xff] }
  0x22   :  { %192 = vmatpush.msra.mxu2 %v177_v20  ;;  %111 = vmatpush.msra.mxu0 %v98_v22  ;;  %v91_v43 = vld [vmem:[#allocation7 + $0x10] sm:$0xff]  ;;  %v129_v46 = vld [vmem:[#allocation7 + $0x80] sm:$0xff]  ;;  %v90_v48 = vld [vmem:[#allocation7 + $0x8] sm:$0xff] }
  0x23   :  { %152 = vmatpush.msra.mxu1 %v137_v21  ;;  %v87_v45 = vld [vmem:[#allocation5 + $0x10] sm:$0xff]  ;;  %v85_v47 = vld [vmem:[#allocation5] sm:$0xff]  ;;  %v88_v50 = vld [vmem:[#allocation5 + $0x18] sm:$0xff] }
  0x24   :  { %193 = vmatpush.msra.mxu2 %v176_v23  ;;  %112 = vmatpush.msra.mxu0 %v97_v25  ;;  %v89_v49 = vld [vmem:[#allocation7] sm:$0xff]  ;;  %v86_v51 = vld [vmem:[#allocation5 + $0x8] sm:$0xff]  ;;  %v314_v57 = vld [vmem:[#allocation7 + $0x278] sm:$0xff] }
  0x25   :  { %153 = vmatpush.msra.mxu1 %v136_v24  ;;  %v313_v58 = vld [vmem:[#allocation7 + $0x270] sm:$0xff]  ;;  %v312_v60 = vld [vmem:[#allocation7 + $0x268] sm:$0xff]  ;;  %v311_v61 = vld [vmem:[#allocation7 + $0x260] sm:$0xff] }
  0x26   :  { %194 = vmatpush.msra.mxu2 %v175_v26  ;;  %113 = vmatpush.msra.mxu0 %v96_v28  ;;  %v966_v62 = vld [vmem:[#allocation2] sm:$0xff]  ;;  %v274_v63 = vld [vmem:[#allocation7 + $0x1f8] sm:$0xff]  ;;  %v353_v2 = vld [vmem:[#allocation7 + $0x2f0] sm:$0xff] }
  0x27   :  { %154 = vmatpush.msra.mxu1 %v135_v27  ;;  %v310_v0 = vld [vmem:[#allocation7 + $0x258] sm:$0xff]  ;;  %v273_v3 = vld [vmem:[#allocation7 + $0x1f0] sm:$0xff]  ;;  %v352_v5 = vld [vmem:[#allocation7 + $0x2e8] sm:$0xff] }
  0x28   :  { %195 = vmatpush.msra.mxu2 %v174_v29  ;;  %114 = vmatpush.msra.mxu0 %v95_v31  ;;  %v354_v1 = vld [vmem:[#allocation7 + $0x2f8] sm:$0xff]  ;;  %v309_v4 = vld [vmem:[#allocation7 + $0x250] sm:$0xff]  ;;  %v272_v6 = vld [vmem:[#allocation7 + $0x1e8] sm:$0xff] }
  0x29   :  { %155 = vmatpush.msra.mxu1 %v134_v30  ;;  %v308_v7 = vld [vmem:[#allocation7 + $0x248] sm:$0xff]  ;;  %v351_v8 = vld [vmem:[#allocation7 + $0x2e0] sm:$0xff]  ;;  %v350_v12 = vld [vmem:[#allocation7 + $0x2d8] sm:$0xff] }
  0x2a   :  { %196 = vmatpush.msra.mxu2 %v173_v32  ;;  %115 = vmatpush.msra.mxu0 %v94_v34  ;;  %v271_v9 = vld [vmem:[#allocation7 + $0x1e0] sm:$0xff]  ;;  %v970_v11 = vld [vmem:[#allocation2 + $0x8] sm:$0xff]  ;;  %v270_v13 = vld [vmem:[#allocation7 + $0x1d8] sm:$0xff] }
  0x2b   :  { %156 = vmatpush.msra.mxu1 %v133_v33  ;;  %v307_v10 = vld [vmem:[#allocation7 + $0x240] sm:$0xff]  ;;  %v306_v14 = vld [vmem:[#allocation7 + $0x238] sm:$0xff]  ;;  %v269_v15 = vld [vmem:[#allocation7 + $0x1d0] sm:$0xff] }
  0x2c   :  { %197 = vmatpush.msra.mxu2 %v172_v35  ;;  %116 = vmatpush.msra.mxu0 %v93_v37  ;;  %v305_v16 = vld [vmem:[#allocation7 + $0x230] sm:$0xff]  ;;  %v268_v17 = vld [vmem:[#allocation7 + $0x1c8] sm:$0xff]  ;;  %v267_v19 = vld [vmem:[#allocation7 + $0x1c0] sm:$0xff] }
  0x2d   :  { %157 = vmatpush.msra.mxu1 %v132_v36  ;;  %v304_v18 = vld [vmem:[#allocation7 + $0x228] sm:$0xff]  ;;  %v303_v20 = vld [vmem:[#allocation7 + $0x220] sm:$0xff]  ;;  %v974_v21 = vld [vmem:[#allocation2 + $0x10] sm:$0xff] }
  0x2e   :  { %198 = vmatpush.msra.mxu2 %v171_v38  ;;  %117 = vmatpush.msra.mxu0 %v92_v40  ;;  %v266_v22 = vld [vmem:[#allocation7 + $0x1b8] sm:$0xff]  ;;  %v265_v24 = vld [vmem:[#allocation7 + $0x1b0] sm:$0xff]  ;;  %v264_v25 = vld [vmem:[#allocation7 + $0x1a8] sm:$0xff] }
  0x2f   :  { %158 = vmatpush.msra.mxu1 %v131_v39  ;;  %v302_v23 = vld [vmem:[#allocation7 + $0x218] sm:$0xff]  ;;  %v263_v26 = vld [vmem:[#allocation7 + $0x1a0] sm:$0xff]  ;;  %v261_v29 = vld [vmem:[#allocation7 + $0x190] sm:$0xff] }
  0x30   :  { %199 = vmatpush.msra.mxu2 %v170_v41  ;;  %118 = vmatpush.msra.mxu0 %v91_v43  ;;  %v978_v27 = vld [vmem:[#allocation2 + $0x18] sm:$0xff]  ;;  %v301_v30 = vld [vmem:[#allocation7 + $0x210] sm:$0xff]  ;;  %v260_v32 = vld [vmem:[#allocation7 + $0x188] sm:$0xff] }
  0x31   :  { %159 = vmatpush.msra.mxu1 %v130_v42  ;;  %v262_v28 = vld [vmem:[#allocation7 + $0x198] sm:$0xff]  ;;  %v349_v31 = vld [vmem:[#allocation7 + $0x2d0] sm:$0xff]  ;;  %v300_v33 = vld [vmem:[#allocation7 + $0x208] sm:$0xff] }
  0x32   :  { %200 = vmatpush.msra.mxu2 %v169_v44  ;;  %119 = vmatpush.msra.mxu0 %v90_v48  ;;  %v348_v34 = vld [vmem:[#allocation7 + $0x2c8] sm:$0xff]  ;;  %v259_v35 = vld [vmem:[#allocation7 + $0x180] sm:$0xff]  ;;  %v346_v38 = vld [vmem:[#allocation7 + $0x2b8] sm:$0xff] }
  0x33   :  { %201 = vmatmul.f32.vlgmr.msra.gmra.mxu2 %v87_v45  ;;  %160 = vmatpush.msra.mxu1 %v129_v46  ;;  %v299_v36 = vld [vmem:[#allocation7 + $0x200] sm:$0xff]  ;;  %v345_v39 = vld [vmem:[#allocation7 + $0x2b0] sm:$0xff]  ;;  %v344_v40 = vld [vmem:[#allocation7 + $0x2a8] sm:$0xff] }
  0x34   :  { %161 = vmatmul.f32.vlgmr.msra.gmra.mxu1 %v85_v47  ;;  %120 = vmatpush.msra.mxu0 %v89_v49  ;;  %v347_v37 = vld [vmem:[#allocation7 + $0x2c0] sm:$0xff]  ;;  %v342_v42 = vld [vmem:[#allocation7 + $0x298] sm:$0xff]  ;;  %v341_v43 = vld [vmem:[#allocation7 + $0x290] sm:$0xff] }
  0x35   :  { %121 = vmatmul.f32.vlgmr.msra.gmra.mxu0 %v85_v47  ;;  %355 = vmatpush.msrb.mxu1 %v354_v1  ;;  %v343_v41 = vld [vmem:[#allocation7 + $0x2a0] sm:$0xff]  ;;  %v340_v44 = vld [vmem:[#allocation7 + $0x288] sm:$0xff] }
  0x36   :  { %315 = vmatpush.msrb.mxu0 %v314_v57  ;;  %v339_v45 = vld [vmem:[#allocation7 + $0x280] sm:$0xff] }
  0x37   :  { %356 = vmatpush.msrb.mxu1 %v353_v2  ;;  %v208_v46 = vld [vmem:[#allocation8] sm:$0xff] }
  0x38   :  { %316 = vmatpush.msrb.mxu0 %v313_v58  ;;  %v211_v58 = vld [vmem:[#allocation8 + $0x18] sm:$0xff] }
  0x39   :  { %357 = vmatpush.msrb.mxu1 %v352_v5  ;;  %v431_v5 = vld [vmem:[#allocation7 + $0x370] sm:$0xff] }
  0x3a   :  { %317 = vmatpush.msrb.mxu0 %v312_v60 }
  0x3b   :  { %204 = vmatmul.f32.gmra.mxu2 %v88_v50  ;;  %358 = vmatpush.msrb.mxu1 %v351_v8  ;;  %v209_v50 = vld [vmem:[#allocation8 + $0x8] sm:$0xff]  ;;  %v429_v8 = vld [vmem:[#allocation7 + $0x360] sm:$0xff] }
  0x3c   :  { %164 = vmatmul.f32.gmra.mxu1 %v86_v51  ;;  %318 = vmatpush.msrb.mxu0 %v311_v61 }
  0x3d   :  { %124 = vmatmul.f32.gmra.mxu0 %v86_v51  ;;  %359 = vmatpush.msrb.mxu1 %v350_v12  ;;  %v512_v12 = vld [vmem:[#allocation7 + $0x478] sm:$0xff] }
  0x3e   :  { %319 = vmatpush.msrb.mxu0 %v310_v0 }
  0x3f   :  { %360 = vmatpush.msrb.mxu1 %v349_v31  ;;  %v465_v31 = vld [vmem:[#allocation7 + $0x3c0] sm:$0xff] }
  0x40   :  { %320 = vmatpush.msrb.mxu0 %v309_v4  ;;  %v432_v4 = vld [vmem:[#allocation7 + $0x378] sm:$0xff] }
  0x41   :  { %361 = vmatpush.msrb.mxu1 %v348_v34  ;;  %v420_v34 = vld [vmem:[#allocation7 + $0x318] sm:$0xff] }
  0x42   :  { %321 = vmatpush.msrb.mxu0 %v308_v7 }
  0x43   :  { %362 = vmatpush.msrb.mxu1 %v347_v37  ;;  %v461_v37 = vld [vmem:[#allocation7 + $0x3a0] sm:$0xff] }
  0x44   :  { %322 = vmatpush.msrb.mxu0 %v307_v10  ;;  %v428_v10 = vld [vmem:[#allocation7 + $0x358] sm:$0xff] }
  0x45   :  { %363 = vmatpush.msrb.mxu1 %v346_v38  ;;  %v460_v38 = vld [vmem:[#allocation7 + $0x398] sm:$0xff] }
  0x46   :  { %323 = vmatpush.msrb.mxu0 %v306_v14  ;;  %v471_v14 = vld [vmem:[#allocation7 + $0x3f0] sm:$0xff] }
  0x47   :  { %364 = vmatpush.msrb.mxu1 %v345_v39  ;;  %v419_v39 = vld [vmem:[#allocation7 + $0x310] sm:$0xff] }
  0x48   :  { %324 = vmatpush.msrb.mxu0 %v305_v16  ;;  %v510_v16 = vld [vmem:[#allocation7 + $0x468] sm:$0xff] }
  0x49   :  { %365 = vmatpush.msrb.mxu1 %v344_v40  ;;  %v459_v40 = vld [vmem:[#allocation7 + $0x390] sm:$0xff] }
  0x4a   :  { %325 = vmatpush.msrb.mxu0 %v304_v18  ;;  %v426_v18 = vld [vmem:[#allocation7 + $0x348] sm:$0xff] }
  0x4b   :  { %366 = vmatpush.msrb.mxu1 %v343_v41  ;;  %v507_v41 = vld [vmem:[#allocation7 + $0x450] sm:$0xff] }
  0x4c   :  { %326 = vmatpush.msrb.mxu0 %v303_v20  ;;  %v469_v20 = vld [vmem:[#allocation7 + $0x3e0] sm:$0xff] }
  0x4d   :  { %367 = vmatpush.msrb.mxu1 %v342_v42  ;;  %v418_v42 = vld [vmem:[#allocation7 + $0x308] sm:$0xff] }
  0x4e   :  { %327 = vmatpush.msrb.mxu0 %v302_v23  ;;  %v508_v23 = vld [vmem:[#allocation7 + $0x458] sm:$0xff] }
  0x4f   :  { %368 = vmatpush.msrb.mxu1 %v341_v43  ;;  %v458_v43 = vld [vmem:[#allocation7 + $0x388] sm:$0xff] }
  0x50   :  { %328 = vmatpush.msrb.mxu0 %v301_v30  ;;  %v422_v30 = vld [vmem:[#allocation7 + $0x328] sm:$0xff] }
  0x51   :  { %369 = vmatpush.msrb.mxu1 %v340_v44  ;;  %v506_v44 = vld [vmem:[#allocation7 + $0x448] sm:$0xff] }
  0x52   :  { %329 = vmatpush.msrb.mxu0 %v300_v33  ;;  %v464_v33 = vld [vmem:[#allocation7 + $0x3b8] sm:$0xff] }
  0x53   :  { %370 = vmatpush.msrb.mxu1 %v339_v45  ;;  %v417_v45 = vld [vmem:[#allocation7 + $0x300] sm:$0xff] }
  0x54   :  { %330 = vmatpush.msrb.mxu0 %v299_v36  ;;  %v462_v36 = vld [vmem:[#allocation7 + $0x3a8] sm:$0xff] }
  0x56   :  { %513 = vmatpush.msra.mxu0 %v512_v12 }
  0xb1   :  { %v162_v53 = vpop.f32.mrf.mxu1 }
  0xb2   :  { %v122_v54 = vpop.f32.mrf.mxu0 }
  0xb6   :  { %v202_v52 = vpop.f32.mrf.mxu2 }
  0xb9   :  { %v165_v56 = vpop.f32.mrf.mxu1 }
  0xba   :  { %v125_v59 = vpop.f32.mrf.mxu0 }
  0xbe   :  { %v205_v55 = vpop.f32.mrf.mxu2 }
  0xbf   :  { %235 = vmatpush.msra.mxu3 %v205_v55 }
  0xc1   :  { %236 = vmatpush.msra.mxu3 %v202_v52 }
  0xc3   :  { %237 = vmatpush.msra.mxu3 %v165_v56 }
  0xc5   :  { %238 = vmatpush.msra.mxu3 %v162_v53 }
  0xc7   :  { %239 = vmatpush.msra.mxu3 %v125_v59 }
  0xc9   :  { %240 = vmatpush.msra.mxu3 %v122_v54  ;;  %v210_v54 = vld [vmem:[#allocation8 + $0x10] sm:$0xff] }
  0xca   :  { %753 = vmatmul.msk.f32.vlgmr.msra.gmra.mxu3 %vm212_vm0, %v966_v62 }
  0xcb   :  { %275 = vmatpush.msrb.mxu3 %v274_v63 }
  0xcd   :  { %276 = vmatpush.msrb.mxu3 %v273_v3 }
  0xcf   :  { %277 = vmatpush.msrb.mxu3 %v272_v6  ;;  %v430_v6 = vld [vmem:[#allocation7 + $0x368] sm:$0xff] }
  0xd1   :  { %278 = vmatpush.msrb.mxu3 %v271_v9  ;;  %v472_v9 = vld [vmem:[#allocation7 + $0x3f8] sm:$0xff] }
  0xd2   :  { %754 = vmatmul.msk.f32.gmra.mxu3 %vm212_vm0, %v970_v11 }
  0xd3   :  { %279 = vmatpush.msrb.mxu3 %v270_v13  ;;  %v511_v13 = vld [vmem:[#allocation7 + $0x470] sm:$0xff] }
  0xd4   :  { %514 = vmatpush.msra.mxu0 %v511_v13 }
  0xd5   :  { %280 = vmatpush.msrb.mxu3 %v269_v15  ;;  %v427_v15 = vld [vmem:[#allocation7 + $0x350] sm:$0xff] }
  0xd6   :  { %515 = vmatpush.msra.mxu0 %v510_v16  ;;  %v589_v16 = vld [vmem:[#allocation7 + $0x4f0] sm:$0xff] }
  0xd7   :  { %281 = vmatpush.msrb.mxu3 %v268_v17  ;;  %v470_v17 = vld [vmem:[#allocation7 + $0x3e8] sm:$0xff] }
  0xd9   :  { %282 = vmatpush.msrb.mxu3 %v267_v19  ;;  %v509_v19 = vld [vmem:[#allocation7 + $0x460] sm:$0xff] }
  0xda   :  { %755 = vmatmul.msk.f32.gmra.mxu3 %vm212_vm0, %v974_v21  ;;  %516 = vmatpush.msra.mxu0 %v509_v19  ;;  %v587_v19 = vld [vmem:[#allocation7 + $0x4e0] sm:$0xff] }
  0xdb   :  { %283 = vmatpush.msrb.mxu3 %v266_v22  ;;  %v425_v22 = vld [vmem:[#allocation7 + $0x340] sm:$0xff] }
  0xdc   :  { %517 = vmatpush.msra.mxu0 %v508_v23  ;;  %v670_v23 = vld [vmem:[#allocation7 + $0x5f8] sm:$0xff] }
  0xdd   :  { %284 = vmatpush.msrb.mxu3 %v265_v24  ;;  %v468_v24 = vld [vmem:[#allocation7 + $0x3d8] sm:$0xff] }
  0xde   :  { %518 = vmatpush.msra.mxu0 %v507_v41  ;;  %v623_v41 = vld [vmem:[#allocation7 + $0x540] sm:$0xff] }
  0xdf   :  { %285 = vmatpush.msrb.mxu3 %v264_v25  ;;  %v424_v25 = vld [vmem:[#allocation7 + $0x338] sm:$0xff] }
  0xe0   :  { %519 = vmatpush.msra.mxu0 %v506_v44  ;;  %v578_v44 = vld [vmem:[#allocation7 + $0x498] sm:$0xff] }
  0xe1   :  { %286 = vmatpush.msrb.mxu3 %v263_v26  ;;  %v467_v26 = vld [vmem:[#allocation7 + $0x3d0] sm:$0xff] }
  0xe2   :  { %756 = vmatmul.msk.f32.gmra.mxu3 %vm212_vm0, %v978_v27 }
  0xe3   :  { %287 = vmatpush.msrb.mxu3 %v262_v28  ;;  %v423_v28 = vld [vmem:[#allocation7 + $0x330] sm:$0xff] }
  0xe5   :  { %288 = vmatpush.msrb.mxu3 %v261_v29  ;;  %v466_v29 = vld [vmem:[#allocation7 + $0x3c8] sm:$0xff] }
  0xe7   :  { %289 = vmatpush.msrb.mxu3 %v260_v32  ;;  %v421_v32 = vld [vmem:[#allocation7 + $0x320] sm:$0xff] }
  0xe9   :  { %290 = vmatpush.msrb.mxu3 %v259_v35  ;;  %v463_v35 = vld [vmem:[#allocation7 + $0x3b0] sm:$0xff] }
  0xeb   :  { %433 = vmatpush.msra.mxu3 %v432_v4 }
  0xed   :  { %434 = vmatpush.msra.mxu3 %v431_v5  ;;  %v382_v5 = vld [vmem:[#allocation8 + $0x38] sm:$0xff] }
  0xef   :  { %435 = vmatpush.msra.mxu3 %v430_v6 }
  0xf1   :  { %436 = vmatpush.msra.mxu3 %v429_v8 }
  0xf3   :  { %437 = vmatpush.msra.mxu3 %v428_v10 }
  0xf5   :  { %438 = vmatpush.msra.mxu3 %v427_v15  ;;  %v590_v15 = vld [vmem:[#allocation7 + $0x4f8] sm:$0xff] }
  0xf7   :  { %439 = vmatpush.msra.mxu3 %v426_v18 }
  0xf9   :  { %440 = vmatpush.msra.mxu3 %v425_v22  ;;  %v586_v22 = vld [vmem:[#allocation7 + $0x4d8] sm:$0xff] }
  0xfb   :  { %441 = vmatpush.msra.mxu3 %v424_v25  ;;  %v629_v25 = vld [vmem:[#allocation7 + $0x570] sm:$0xff] }
  0xfd   :  { %442 = vmatpush.msra.mxu3 %v423_v28  ;;  %v668_v28 = vld [vmem:[#allocation7 + $0x5e8] sm:$0xff] }
  0xff   :  { %443 = vmatpush.msra.mxu3 %v422_v30  ;;  %v584_v30 = vld [vmem:[#allocation7 + $0x4c8] sm:$0xff] }
 0x101   :  { %444 = vmatpush.msra.mxu3 %v421_v32  ;;  %v627_v32 = vld [vmem:[#allocation7 + $0x560] sm:$0xff] }
 0x103   :  { %445 = vmatpush.msra.mxu3 %v420_v34  ;;  %v666_v34 = vld [vmem:[#allocation7 + $0x5d8] sm:$0xff] }
 0x105   :  { %446 = vmatpush.msra.mxu3 %v419_v39  ;;  %v624_v39 = vld [vmem:[#allocation7 + $0x548] sm:$0xff] }
 0x107   :  { %447 = vmatpush.msra.mxu3 %v418_v42  ;;  %v579_v42 = vld [vmem:[#allocation7 + $0x4a0] sm:$0xff] }
 0x109   :  { %448 = vmatpush.msra.mxu3 %v417_v45  ;;  %v621_v45 = vld [vmem:[#allocation7 + $0x530] sm:$0xff] }
 0x14d   :  { %v242_v47 = vpop.f32.mrf.mxu3 }
 0x14e   :  { %v243_v48 = vadd.f32 %v242_v47, %v208_v46  ;;  %v457_v46 = vld [vmem:[#allocation7 + $0x380] sm:$0xff] }
 0x14f   :  { %v505_v47 = vld [vmem:[#allocation7 + $0x440] sm:$0xff] }
 0x150   :  { %v254_v49 = vmax.f32 %v243_v48, 0.0  ;;  %520 = vmatpush.msra.mxu0 %v505_v47  ;;  %v504_v48 = vld [vmem:[#allocation7 + $0x438] sm:$0xff]  ;;  %v619_v47 = vld [vmem:[#allocation7 + $0x520] sm:$0xff] }
 0x152   :  { %291 = vmatmul.f32.vlgmr.msrb.gmra.mxu3 %v254_v49  ;;  %331 = vmatmul.f32.vlgmr.msrb.gmra.mxu0 %v254_v49  ;;  %v503_v49 = vld [vmem:[#allocation7 + $0x430] sm:$0xff] }
 0x153   :  { %521 = vmatpush.msra.mxu0 %v504_v48  ;;  %591 = vmatpush.msrb.mxu3 %v590_v15  ;;  %v618_v48 = vld [vmem:[#allocation7 + $0x518] sm:$0xff] }
 0x155   :  { %v245_v51 = vpop.f32.mrf.mxu3  ;;  %522 = vmatpush.msra.mxu0 %v503_v49  ;;  %592 = vmatpush.msrb.mxu3 %v589_v16  ;;  %v577_v49 = vld [vmem:[#allocation7 + $0x490] sm:$0xff]  ;;  %v540_v16 = vld [vmem:[#allocation8 + $0x58] sm:$0xff] }
 0x156   :  { %v246_v52 = vadd.f32 %v245_v51, %v209_v50  ;;  %v502_v50 = vld [vmem:[#allocation7 + $0x428] sm:$0xff]  ;;  %v501_v51 = vld [vmem:[#allocation7 + $0x420] sm:$0xff] }
 0x157   :  { %523 = vmatpush.msra.mxu0 %v502_v50  ;;  %v617_v50 = vld [vmem:[#allocation7 + $0x510] sm:$0xff] }
 0x158   :  { %v255_v53 = vmax.f32 %v246_v52, 0.0  ;;  %v500_v52 = vld [vmem:[#allocation7 + $0x418] sm:$0xff] }
 0x159   :  { %524 = vmatpush.msra.mxu0 %v501_v51  ;;  %v665_v51 = vld [vmem:[#allocation7 + $0x5d0] sm:$0xff] }
 0x15a   :  { %294 = vmatmul.f32.gmra.mxu3 %v255_v53  ;;  %334 = vmatmul.f32.gmra.mxu0 %v255_v53  ;;  %v499_v53 = vld [vmem:[#allocation7 + $0x410] sm:$0xff] }
 0x15b   :  { %525 = vmatpush.msra.mxu0 %v500_v52  ;;  %v576_v52 = vld [vmem:[#allocation7 + $0x488] sm:$0xff] }
 0x15d   :  { %v248_v55 = vpop.f32.mrf.mxu3  ;;  %526 = vmatpush.msra.mxu0 %v499_v53  ;;  %v616_v53 = vld [vmem:[#allocation7 + $0x508] sm:$0xff] }
 0x15e   :  { %v249_v56 = vadd.f32 %v248_v55, %v210_v54  ;;  %v498_v54 = vld [vmem:[#allocation7 + $0x408] sm:$0xff]  ;;  %v497_v55 = vld [vmem:[#allocation7 + $0x400] sm:$0xff] }
 0x15f   :  { %527 = vmatpush.msra.mxu0 %v498_v54  ;;  %v664_v54 = vld [vmem:[#allocation7 + $0x5c8] sm:$0xff] }
 0x160   :  { %v256_v57 = vmax.f32 %v249_v56, 0.0  ;;  %v379_v56 = vld [vmem:[#allocation8 + $0x20] sm:$0xff] }
 0x161   :  { %528 = vmatpush.msra.mxu0 %v497_v55  ;;  %v575_v55 = vld [vmem:[#allocation7 + $0x480] sm:$0xff] }
 0x162   :  { %371 = vmatmul.f32.vlgmr.msrb.gmra.mxu1 %v256_v57 }
 0x165   :  { %v251_v59 = vpop.f32.mrf.mxu3 }
 0x166   :  { %v252_v60 = vadd.f32 %v251_v59, %v211_v58 }
 0x168   :  { %v257_v61 = vmax.f32 %v252_v60, 0.0  ;;  %v380_v60 = vld [vmem:[#allocation8 + $0x28] sm:$0xff] }
 0x16a   :  { %374 = vmatmul.f32.gmra.mxu1 %v257_v61 }
 0x1cf   :  { %v332_v0 = vpop.f32.mrf.mxu0 }
 0x1d5   :  { %v292_v1 = vpop.f32.mrf.mxu3 }
 0x1d7   :  { %v335_v3 = vpop.f32.mrf.mxu0 }
 0x1dd   :  { %v295_v7 = vpop.f32.mrf.mxu3 }
 0x1df   :  { %v372_v63 = vpop.f32.mrf.mxu1 }
 0x1e7   :  { %v375_v2 = vpop.f32.mrf.mxu1 }
 0x1e8   :  { %393 = vmatpush.msrb.mxu2 %v375_v2 }
 0x1ea   :  { %394 = vmatpush.msrb.mxu2 %v372_v63 }
 0x1ec   :  { %395 = vmatpush.msrb.mxu2 %v335_v3 }
 0x1ee   :  { %396 = vmatpush.msrb.mxu2 %v332_v0 }
 0x1f0   :  { %397 = vmatpush.msrb.mxu2 %v295_v7 }
 0x1f2   :  { %398 = vmatpush.msrb.mxu2 %v292_v1  ;;  %v381_v1 = vld [vmem:[#allocation8 + $0x30] sm:$0xff] }
 0x1f3   :  { %757 = vmatmul.msk.f32.vlgmr.msrb.gmra.mxu2 %vm212_vm0, %v966_v62 }
 0x1f4   :  { %473 = vmatpush.msra.mxu2 %v472_v9 }
 0x1f6   :  { %474 = vmatpush.msra.mxu2 %v471_v14 }
 0x1f8   :  { %475 = vmatpush.msra.mxu2 %v470_v17  ;;  %v588_v17 = vld [vmem:[#allocation7 + $0x4e8] sm:$0xff] }
 0x1f9   :  { %593 = vmatpush.msrb.mxu3 %v588_v17 }
 0x1fa   :  { %476 = vmatpush.msra.mxu2 %v469_v20  ;;  %v630_v20 = vld [vmem:[#allocation7 + $0x578] sm:$0xff] }
 0x1fb   :  { %758 = vmatmul.msk.f32.gmra.mxu2 %vm212_vm0, %v970_v11  ;;  %594 = vmatpush.msrb.mxu3 %v587_v19 }
 0x1fc   :  { %477 = vmatpush.msra.mxu2 %v468_v24  ;;  %v669_v24 = vld [vmem:[#allocation7 + $0x5f0] sm:$0xff] }
 0x1fd   :  { %595 = vmatpush.msrb.mxu3 %v586_v22 }
 0x1fe   :  { %478 = vmatpush.msra.mxu2 %v467_v26  ;;  %v585_v26 = vld [vmem:[#allocation7 + $0x4d0] sm:$0xff] }
 0x1ff   :  { %596 = vmatpush.msrb.mxu3 %v585_v26 }
 0x200   :  { %479 = vmatpush.msra.mxu2 %v466_v29  ;;  %v628_v29 = vld [vmem:[#allocation7 + $0x568] sm:$0xff] }
 0x201   :  { %597 = vmatpush.msrb.mxu3 %v584_v30 }
 0x202   :  { %480 = vmatpush.msra.mxu2 %v465_v31  ;;  %v667_v31 = vld [vmem:[#allocation7 + $0x5e0] sm:$0xff] }
 0x203   :  { %759 = vmatmul.msk.f32.gmra.mxu2 %vm212_vm0, %v974_v21 }
 0x204   :  { %481 = vmatpush.msra.mxu2 %v464_v33  ;;  %v583_v33 = vld [vmem:[#allocation7 + $0x4c0] sm:$0xff] }
 0x205   :  { %598 = vmatpush.msrb.mxu3 %v583_v33 }
 0x206   :  { %482 = vmatpush.msra.mxu2 %v463_v35  ;;  %v626_v35 = vld [vmem:[#allocation7 + $0x558] sm:$0xff] }
 0x208   :  { %483 = vmatpush.msra.mxu2 %v462_v36  ;;  %v582_v36 = vld [vmem:[#allocation7 + $0x4b8] sm:$0xff] }
 0x209   :  { %599 = vmatpush.msrb.mxu3 %v582_v36 }
 0x20a   :  { %484 = vmatpush.msra.mxu2 %v461_v37  ;;  %v625_v37 = vld [vmem:[#allocation7 + $0x550] sm:$0xff] }
 0x20b   :  { %760 = vmatmul.msk.f32.gmra.mxu2 %vm212_vm0, %v978_v27 }
 0x20c   :  { %485 = vmatpush.msra.mxu2 %v460_v38  ;;  %v581_v38 = vld [vmem:[#allocation7 + $0x4b0] sm:$0xff] }
 0x20d   :  { %600 = vmatpush.msrb.mxu3 %v581_v38 }
 0x20e   :  { %486 = vmatpush.msra.mxu2 %v459_v40  ;;  %v580_v40 = vld [vmem:[#allocation7 + $0x4a8] sm:$0xff] }
 0x20f   :  { %601 = vmatpush.msrb.mxu3 %v580_v40 }
 0x210   :  { %487 = vmatpush.msra.mxu2 %v458_v43  ;;  %v622_v43 = vld [vmem:[#allocation7 + $0x538] sm:$0xff] }
 0x211   :  { %602 = vmatpush.msrb.mxu3 %v579_v42 }
 0x212   :  { %488 = vmatpush.msra.mxu2 %v457_v46  ;;  %v620_v46 = vld [vmem:[#allocation7 + $0x528] sm:$0xff] }
 0x213   :  { %603 = vmatpush.msrb.mxu3 %v578_v44 }
 0x214   :  { %671 = vmatpush.msrb.mxu2 %v670_v23 }
 0x215   :  { %604 = vmatpush.msrb.mxu3 %v577_v49 }
 0x216   :  { %672 = vmatpush.msrb.mxu2 %v669_v24 }
 0x217   :  { %605 = vmatpush.msrb.mxu3 %v576_v52 }
 0x218   :  { %673 = vmatpush.msrb.mxu2 %v668_v28  ;;  %v695_v28 = vld [vmem:[#allocation8 + $0x60] sm:$0xff] }
 0x219   :  { %606 = vmatpush.msrb.mxu3 %v575_v55 }
 0x21a   :  { %674 = vmatpush.msrb.mxu2 %v667_v31  ;;  %v698_v31 = vld [vmem:[#allocation8 + $0x78] sm:$0xff] }
 0x21c   :  { %675 = vmatpush.msrb.mxu2 %v666_v34 }
 0x21e   :  { %676 = vmatpush.msrb.mxu2 %v665_v51 }
 0x220   :  { %677 = vmatpush.msrb.mxu2 %v664_v54 }
 0x276   :  { %v400_v57 = vpop.f32.mrf.mxu2 }
 0x277   :  { %v401_v58 = vadd.f32 %v400_v57, %v379_v56  ;;  %v615_v56 = vld [vmem:[#allocation7 + $0x500] sm:$0xff] }
 0x278   :  { %v663_v57 = vld [vmem:[#allocation7 + $0x5c0] sm:$0xff] }
 0x279   :  { %v412_v59 = vmax.f32 %v401_v58, 0.0  ;;  %678 = vmatpush.msrb.mxu2 %v663_v57  ;;  %v662_v58 = vld [vmem:[#allocation7 + $0x5b8] sm:$0xff] }
 0x27b   :  { %449 = vmatmul.f32.vlgmr.msra.gmra.mxu3 %v412_v59  ;;  %489 = vmatmul.f32.vlgmr.msra.gmra.mxu2 %v412_v59  ;;  %v661_v59 = vld [vmem:[#allocation7 + $0x5b0] sm:$0xff] }
 0x27c   :  { %679 = vmatpush.msrb.mxu2 %v662_v58 }
 0x27e   :  { %v403_v61 = vpop.f32.mrf.mxu2  ;;  %680 = vmatpush.msrb.mxu2 %v661_v59 }
 0x27f   :  { %v404_v63 = vadd.f32 %v403_v61, %v380_v60  ;;  %v660_v60 = vld [vmem:[#allocation7 + $0x5a8] sm:$0xff]  ;;  %v659_v61 = vld [vmem:[#allocation7 + $0x5a0] sm:$0xff] }
 0x280   :  { %681 = vmatpush.msrb.mxu2 %v660_v60 }
 0x281   :  { %v413_v0 = vmax.f32 %v404_v63, 0.0  ;;  %v658_v63 = vld [vmem:[#allocation7 + $0x598] sm:$0xff] }
 0x282   :  { %682 = vmatpush.msrb.mxu2 %v659_v61 }
 0x283   :  { %452 = vmatmul.f32.gmra.mxu3 %v413_v0  ;;  %492 = vmatmul.f32.gmra.mxu2 %v413_v0  ;;  %v657_v0 = vld [vmem:[#allocation7 + $0x590] sm:$0xff] }
 0x284   :  { %683 = vmatpush.msrb.mxu2 %v658_v63 }
 0x286   :  { %v406_v2 = vpop.f32.mrf.mxu2  ;;  %684 = vmatpush.msrb.mxu2 %v657_v0 }
 0x287   :  { %v407_v3 = vadd.f32 %v406_v2, %v381_v1  ;;  %v656_v1 = vld [vmem:[#allocation7 + $0x588] sm:$0xff]  ;;  %v655_v2 = vld [vmem:[#allocation7 + $0x580] sm:$0xff] }
 0x288   :  { %685 = vmatpush.msrb.mxu2 %v656_v1 }
 0x289   :  { %v414_v4 = vmax.f32 %v407_v3, 0.0  ;;  %v537_v3 = vld [vmem:[#allocation8 + $0x40] sm:$0xff] }
 0x28a   :  { %686 = vmatpush.msrb.mxu2 %v655_v2 }
 0x28b   :  { %529 = vmatmul.f32.vlgmr.msra.gmra.mxu0 %v414_v4 }
 0x28e   :  { %v409_v6 = vpop.f32.mrf.mxu2 }
 0x28f   :  { %v410_v7 = vadd.f32 %v409_v6, %v382_v5 }
 0x291   :  { %v415_v8 = vmax.f32 %v410_v7, 0.0  ;;  %v538_v7 = vld [vmem:[#allocation8 + $0x48] sm:$0xff] }
 0x293   :  { %532 = vmatmul.f32.gmra.mxu0 %v415_v8 }
 0x2fe   :  { %v490_v10 = vpop.f32.mrf.mxu2  ;;  %v450_v12 = vpop.f32.mrf.mxu3 }
 0x306   :  { %v493_v14 = vpop.f32.mrf.mxu2  ;;  %v453_v18 = vpop.f32.mrf.mxu3 }
 0x308   :  { %v530_v9 = vpop.f32.mrf.mxu0 }
 0x310   :  { %v533_v13 = vpop.f32.mrf.mxu0 }
 0x311   :  { %551 = vmatpush.msra.mxu1 %v533_v13 }
 0x313   :  { %552 = vmatpush.msra.mxu1 %v530_v9 }
 0x315   :  { %553 = vmatpush.msra.mxu1 %v493_v14 }
 0x317   :  { %554 = vmatpush.msra.mxu1 %v490_v10 }
 0x319   :  { %555 = vmatpush.msra.mxu1 %v453_v18 }
 0x31b   :  { %556 = vmatpush.msra.mxu1 %v450_v12  ;;  %v539_v12 = vld [vmem:[#allocation8 + $0x50] sm:$0xff] }
 0x31c   :  { %761 = vmatmul.msk.f32.vlgmr.msra.gmra.mxu1 %vm212_vm0, %v966_v62 }
 0x31d   :  { %631 = vmatpush.msrb.mxu1 %v630_v20 }
 0x31f   :  { %632 = vmatpush.msrb.mxu1 %v629_v25 }
 0x321   :  { %633 = vmatpush.msrb.mxu1 %v628_v29 }
 0x323   :  { %634 = vmatpush.msrb.mxu1 %v627_v32  ;;  %v696_v32 = vld [vmem:[#allocation8 + $0x68] sm:$0xff] }
 0x324   :  { %762 = vmatmul.msk.f32.gmra.mxu1 %vm212_vm0, %v970_v11 }
 0x325   :  { %635 = vmatpush.msrb.mxu1 %v626_v35 }
 0x327   :  { %636 = vmatpush.msrb.mxu1 %v625_v37 }
 0x329   :  { %637 = vmatpush.msrb.mxu1 %v624_v39 }
 0x32b   :  { %638 = vmatpush.msrb.mxu1 %v623_v41 }
 0x32c   :  { %763 = vmatmul.msk.f32.gmra.mxu1 %vm212_vm0, %v974_v21 }
 0x32d   :  { %639 = vmatpush.msrb.mxu1 %v622_v43 }
 0x32f   :  { %640 = vmatpush.msrb.mxu1 %v621_v45 }
 0x331   :  { %641 = vmatpush.msrb.mxu1 %v620_v46 }
 0x333   :  { %642 = vmatpush.msrb.mxu1 %v619_v47 }
 0x334   :  { %764 = vmatmul.msk.f32.gmra.mxu1 %vm212_vm0, %v978_v27 }
 0x335   :  { %643 = vmatpush.msrb.mxu1 %v618_v48 }
 0x337   :  { %644 = vmatpush.msrb.mxu1 %v617_v50 }
 0x339   :  { %645 = vmatpush.msrb.mxu1 %v616_v53 }
 0x33b   :  { %646 = vmatpush.msrb.mxu1 %v615_v56 }
 0x399   :  { %v558_v4 = vpop.f32.mrf.mxu1 }
 0x39a   :  { %v559_v5 = vadd.f32 %v558_v4, %v537_v3 }
 0x39c   :  { %v570_v6 = vmax.f32 %v559_v5, 0.0 }
 0x39e   :  { %607 = vmatmul.f32.vlgmr.msrb.gmra.mxu3 %v570_v6  ;;  %647 = vmatmul.f32.vlgmr.msrb.gmra.mxu1 %v570_v6 }
 0x3a1   :  { %v561_v8 = vpop.f32.mrf.mxu1 }
 0x3a2   :  { %v562_v9 = vadd.f32 %v561_v8, %v538_v7 }
 0x3a4   :  { %v571_v10 = vmax.f32 %v562_v9, 0.0 }
 0x3a6   :  { %610 = vmatmul.f32.gmra.mxu3 %v571_v10  ;;  %650 = vmatmul.f32.gmra.mxu1 %v571_v10 }
 0x3a9   :  { %v564_v13 = vpop.f32.mrf.mxu1 }
 0x3aa   :  { %v565_v14 = vadd.f32 %v564_v13, %v539_v12 }
 0x3ac   :  { %v572_v15 = vmax.f32 %v565_v14, 0.0 }
 0x3ae   :  { %687 = vmatmul.f32.vlgmr.msrb.gmra.mxu2 %v572_v15 }
 0x3b1   :  { %v567_v17 = vpop.f32.mrf.mxu1 }
 0x3b2   :  { %v568_v18 = vadd.f32 %v567_v17, %v540_v16 }
 0x3b4   :  { %v573_v19 = vmax.f32 %v568_v18, 0.0 }
 0x3b6   :  { %690 = vmatmul.f32.gmra.mxu2 %v573_v19 }
 0x41b   :  { %v648_v22 = vpop.f32.mrf.mxu1 }
 0x421   :  { %v608_v23 = vpop.f32.mrf.mxu3 }
 0x423   :  { %v651_v25 = vpop.f32.mrf.mxu1 }
 0x429   :  { %v611_v26 = vpop.f32.mrf.mxu3 }
 0x431   :  { %v688_v20 = vpop.f32.mrf.mxu2 }
 0x439   :  { %v691_v24 = vpop.f32.mrf.mxu2 }
 0x43a   :  { %709 = vmatpush.msrb.mxu0 %v691_v24  ;;  %769 = vmatpush.msra.mxu3 %v691_v24 }
 0x43c   :  { %710 = vmatpush.msrb.mxu0 %v688_v20  ;;  %770 = vmatpush.msra.mxu3 %v688_v20 }
 0x43e   :  { %711 = vmatpush.msrb.mxu0 %v651_v25  ;;  %771 = vmatpush.msra.mxu3 %v651_v25 }
 0x440   :  { %712 = vmatpush.msrb.mxu0 %v648_v22  ;;  %772 = vmatpush.msra.mxu3 %v648_v22 }
 0x442   :  { %713 = vmatpush.msrb.mxu0 %v611_v26  ;;  %773 = vmatpush.msra.mxu3 %v611_v26 }
 0x444   :  { %714 = vmatpush.msrb.mxu0 %v608_v23  ;;  %774 = vmatpush.msra.mxu3 %v608_v23 }
 0x445   :  { %765 = vmatmul.msk.f32.vlgmr.msrb.gmra.mxu0 %vm212_vm0, %v966_v62  ;;  %768 = vmatmul.msk.f32.vlgmr.msra.gmra.mxu3 %vm212_vm0, %v978_v27  ;;  %v697_v62 = vld [vmem:[#allocation8 + $0x70] sm:$0xff] }
 0x44d   :  { %766 = vmatmul.msk.f32.gmra.mxu0 %vm212_vm0, %v970_v11 }
 0x455   :  { %767 = vmatmul.msk.f32.gmra.mxu0 %vm212_vm0, %v974_v21 }
 0x4c2   :  { %v716_v29 = vpop.f32.mrf.mxu0 }
 0x4c3   :  { %v717_v30 = vadd.f32 %v716_v29, %v695_v28 }
 0x4c5   :  { %728 = vst [vmem:[#allocation10] sm:$0xff] %v717_v30 }
 0x4c8   :  { %v725_v33 = vpop.f32.mrf.mxu3 }
 0x4c9   :  { %v726_v34 = vadd.f32 %v725_v33, %v698_v31 }
 0x4ca   :  { %v719_v35 = vpop.f32.mrf.mxu0 }
 0x4cb   :  { %v720_v36 = vadd.f32 %v719_v35, %v696_v32  ;;  %731 = vst [vmem:[#allocation10 + $0x18] sm:$0xff] %v726_v34 }
 0x4cd   :  { %729 = vst [vmem:[#allocation10 + $0x8] sm:$0xff] %v720_v36 }
 0x4d2   :  { %v722_v11 = vpop.f32.mrf.mxu0 }
 0x4d3   :  { %v723_v21 = vadd.f32 %v722_v11, %v697_v62 }
 0x4d5   :  { %730 = vst [vmem:[#allocation10 + $0x10] sm:$0xff] %v723_v21 }
 0x4d6   :  { %744 = dma.vmem_to_hbm [thread:$0]  %s737_s8, 512, %s739_s11, [#allocation4], %s911_s23, %s911_s23, %s912_s24  }
 0x4d7   :  { %908 = dma.done.wait [#allocation4], 512  }
 0x4d8   :  { %909 = vsyncadd [#allocation4], 4294966784 }
 0x4d9   :  { %749 = vsyncpa [#allocation3], 1 }
 0x4da   :  { %750 = vsyncpa [#allocation6], 1 }
 0x4db   :  { %751 = vsyncpa [#allocation9], 1 }
 0x4dc   :  { %752 = vsyncpa [#allocation4], 1 }

</bundles_post_ra>
